<compile_context>
chip_gen: v7x
topology: tpu7x:2x2x1
jax: 0.10.0
libtpu: 0.0.40
codegen_flags: <defaults>
</compile_context>

<pallas_src>
import jax
import jax.numpy as jnp
from jax.experimental import pallas as pl
from jax.experimental.pallas import tpu as pltpu


def char_decoder_kernel(ids_ref, w_fold_ref, w_hh_ref, state0_ref,
                        w_proj_ref, s_ref, stateT_ref, h_all):
    # Static shapes:
    #   ids     (L*Bp, 1) int32
    #   w_fold  (V, 4H)   = emb @ W_ih_perm^T + b_perm         (bias folded in)
    #   w_hh    (H, 4H)   = W_hh_perm^T
    #   state0  (2*Bp, H) = [h0 ; c0]
    #   w_proj  (H+1, V)  = [W_proj^T ; b_proj]                (bias as last row)
    #   s       (L*Bp, V) output scores
    #   stateT  (2*Bp, H) output [hT ; cT]
    #   h_all   (L*Bp, H) VMEM scratch staging every h_t
    Bp = state0_ref.shape[0] // 2
    H = state0_ref.shape[1]
    V = w_fold_ref.shape[0]
    LBp = h_all.shape[0]
    L = LBp // Bp

    # --- Fused embedding lookup + input-gate matmul + bias:
    #     one-hot (L*Bp, V) @ w_fold (V, 4H) on the MXU == gather(emb)[ids] @ W_ih^T + b.
    #     (Out-of-range ids would give an all-zero row instead of nn.Embedding's
    #      OOB gather; benign since valid ids are in [0, V).)
    ids = ids_ref[...]                                                    # (L*Bp, 1)
    onehot = (ids == jax.lax.broadcasted_iota(jnp.int32, (LBp, V), 1)
              ).astype(jnp.float32)                                       # (L*Bp, V)
    gates_x = jnp.dot(onehot, w_fold_ref[...],
                      preferred_element_type=jnp.float32)                 # (L*Bp, 4H)

    w_hh = w_hh_ref[...]                                                  # (H, 4H)
    h = state0_ref[0:Bp, :]                                               # (Bp, H)
    c = state0_ref[Bp:2 * Bp, :]                                          # (Bp, H)

    # --- Serial LSTM recurrence, fully unrolled (L is a trace-time constant).
    #     Gate layout is permuted to (i, f, o, g): one sigmoid over the first
    #     3H lanes, one tanh over the last H lanes.
    for t in range(L):
        gates = gates_x[t * Bp:(t + 1) * Bp, :] + jnp.dot(
            h, w_hh, preferred_element_type=jnp.float32)                  # (Bp, 4H)
        sig = jax.nn.sigmoid(gates[:, 0:3 * H])                           # i | f | o
        g_g = jnp.tanh(gates[:, 3 * H:4 * H])                             # g
        i_g = sig[:, 0:H]
        f_g = sig[:, H:2 * H]
        o_g = sig[:, 2 * H:3 * H]
        c = f_g * c + i_g * g_g
        h = o_g * jnp.tanh(c)
        h_all[t * Bp:(t + 1) * Bp, :] = h                                 # stage h_t

    # --- Final LSTM state: written exactly once, packed [hT ; cT].
    stateT_ref[0:Bp, :] = h
    stateT_ref[Bp:2 * Bp, :] = c

    # --- char_output_projection for ALL time steps: one matmul + one store.
    #     Bias is the last row of the packed projection operand.
    s_ref[...] = (jnp.dot(h_all[...], w_proj_ref[0:H, :],
                          preferred_element_type=jnp.float32)
                  + w_proj_ref[H:H + 1, :])                               # (L*Bp, V)


def char_decoder_forward(input_ids, emb_table, lstm_params, proj_params, dec_hidden):
    """Pallas equivalent of CharDecoder.forward.

    input_ids:  (L, B) int32
    emb_table:  (V, E) f32 (row at padding_idx zeroed, as nn.Embedding keeps it)
    lstm_params: (w_ih (4H,E), w_hh (4H,H), b_ih (4H,), b_hh (4H,))  -- PyTorch layout
    proj_params: (w_proj (V,H), b_proj (V,))
    dec_hidden:  (h0 (1,B,H), c0 (1,B,H))
    returns: scores (L, B, V), (hT (1,B,H), cT (1,B,H))
    """
    w_ih, w_hh, b_ih, b_hh = lstm_params
    w_proj, b_proj = proj_params
    h0, c0 = dec_hidden

    L, B = input_ids.shape
    V, E = emb_table.shape
    H = w_hh.shape[1]
    Bp = max(8, ((B + 7) // 8) * 8)            # pad batch to full sublanes

    # --- Gate-order permutation: PyTorch (i, f, g, o) -> kernel (i, f, o, g).
    def permute_gates(m):
        return jnp.concatenate(
            [m[0:H], m[H:2 * H], m[3 * H:4 * H], m[2 * H:3 * H]], axis=0)

    w_ih_p = permute_gates(w_ih.astype(jnp.float32))            # (4H, E)
    w_hh_p = permute_gates(w_hh.astype(jnp.float32))            # (4H, H)
    b_p = permute_gates((b_ih + b_hh).astype(jnp.float32))      # (4H,)

    # --- Fold embedding + input matmul + bias into one (V, 4H) lookup table.
    #     Done at HIGHEST precision so the folded weights match the reference.
    w_fold = jnp.dot(emb_table.astype(jnp.float32), w_ih_p.T,
                     precision=jax.lax.Precision.HIGHEST) + b_p[None, :]  # (V, 4H)
    w_hh_t = w_hh_p.T                                            # (H, 4H)

    # --- Pack projection weight + bias into one operand (bias = last row).
    w_proj_pk = jnp.concatenate(
        [w_proj.T.astype(jnp.float32),
         b_proj.reshape(1, V).astype(jnp.float32)], axis=0)      # (H+1, V)

    # --- Pad batch to Bp and pack h0/c0 into one (2*Bp, H) operand.
    ids_pad = jnp.zeros((L, Bp), jnp.int32).at[:, :B].set(input_ids.astype(jnp.int32))
    ids_flat = ids_pad.reshape(L * Bp, 1)
    state0 = jnp.zeros((2 * Bp, H), jnp.float32)
    state0 = state0.at[0:B, :].set(h0.reshape(B, H).astype(jnp.float32))
    state0 = state0.at[Bp:Bp + B, :].set(c0.reshape(B, H).astype(jnp.float32))

    def vmem_spec():
        return pl.BlockSpec(memory_space=pltpu.MemorySpace.VMEM)

    scores_flat, stateT = pl.pallas_call(
        char_decoder_kernel,
        out_shape=(
            jax.ShapeDtypeStruct((L * Bp, V), jnp.float32),      # scores (flat time)
            jax.ShapeDtypeStruct((2 * Bp, H), jnp.float32),      # [hT ; cT]
        ),
        in_specs=[vmem_spec() for _ in range(5)],
        out_specs=(vmem_spec(), vmem_spec()),
        scratch_shapes=[pltpu.VMEM((L * Bp, H), jnp.float32)],   # staged h_t per step
    )(ids_flat, w_fold, w_hh_t, state0, w_proj_pk)

    scores = scores_flat.reshape(L, Bp, V)[:, :B, :]
    hT = stateT[0:B, :].reshape(1, B, H)
    cT = stateT[Bp:Bp + B, :].reshape(1, B, H)
    return scores, (hT, cT)


def _reference_forward(input_ids, emb_table, lstm_params, proj_params, dec_hidden):
    """Pure-JAX reference (PyTorch nn.LSTM semantics) for correctness checking."""
    w_ih, w_hh, b_ih, b_hh = lstm_params
    w_proj, b_proj = proj_params
    h0, c0 = dec_hidden
    H = w_hh.shape[1]
    x = emb_table[input_ids].astype(jnp.float32)        # (L, B, E)

    def step(carry, x_t):
        h, c = carry
        gates = x_t @ w_ih.T + h @ w_hh.T + b_ih + b_hh
        i_g = jax.nn.sigmoid(gates[:, 0:H])
        f_g = jax.nn.sigmoid(gates[:, H:2 * H])
        g_g = jnp.tanh(gates[:, 2 * H:3 * H])
        o_g = jax.nn.sigmoid(gates[:, 3 * H:4 * H])
        c = f_g * c + i_g * g_g
        h = o_g * jnp.tanh(c)
        return (h, c), h

    with jax.default_matmul_precision("highest"):
        (hT, cT), hs = jax.lax.scan(step, (h0[0], c0[0]), x)
        s = hs @ w_proj.T + b_proj
    return s, (hT[None], cT[None])


if __name__ == "__main__":
    # Small shapes consistent with CharDecoder:
    #   hidden_size=32, char_embedding_size=50, character vocab=32, length=8, batch=4
    L, B = 8, 4
    H = 32          # hidden_size
    E = 50          # char_embedding_size
    V = 32          # len(target_vocab.char2id)
    PAD_IDX = 0     # target_vocab.char2id['<pad>']

    key = jax.random.PRNGKey(0)
    ks = jax.random.split(key, 9)

    # Deterministic synthetic parameters (shapes match nn.LSTM / nn.Linear / nn.Embedding).
    emb_table = 0.1 * jax.random.normal(ks[0], (V, E), jnp.float32)
    emb_table = emb_table.at[PAD_IDX].set(0.0)          # padding_idx row is zero

    w_ih = 0.1 * jax.random.normal(ks[1], (4 * H, E), jnp.float32)
    w_hh = 0.1 * jax.random.normal(ks[2], (4 * H, H), jnp.float32)
    b_ih = 0.1 * jax.random.normal(ks[3], (4 * H,), jnp.float32)
    b_hh = 0.1 * jax.random.normal(ks[4], (4 * H,), jnp.float32)

    w_proj = 0.1 * jax.random.normal(ks[5], (V, H), jnp.float32)
    b_proj = 0.1 * jax.random.normal(ks[6], (V,), jnp.float32)

    # Inputs: char ids (length, batch) and initial dec_hidden (1, batch, hidden).
    input_ids = jax.random.randint(ks[7], (L, B), 0, V, dtype=jnp.int32)
    h0 = 0.1 * jax.random.normal(ks[8], (1, B, H), jnp.float32)
    c0 = jnp.zeros((1, B, H), jnp.float32)

    lstm_params = (w_ih, w_hh, b_ih, b_hh)
    proj_params = (w_proj, b_proj)

    scores, (hT, cT) = char_decoder_forward(
        input_ids, emb_table, lstm_params, proj_params, (h0, c0)
    )
    jax.block_until_ready((scores, hT, cT))

    assert scores.shape == (L, B, V)
    assert hT.shape == (1, B, H) and cT.shape == (1, B, H)

    # Correctness check against a pure-JAX reference.
    s_ref, (hT_ref, cT_ref) = _reference_forward(
        input_ids, emb_table, lstm_params, proj_params, (h0, c0)
    )
    jax.block_until_ready((s_ref, hT_ref, cT_ref))
    err_s = float(jnp.max(jnp.abs(scores - s_ref)))
    err_h = float(jnp.max(jnp.abs(hT - hT_ref)))
    err_c = float(jnp.max(jnp.abs(cT - cT_ref)))
    assert err_s < 1e-3 and err_h < 1e-3 and err_c < 1e-3, (err_s, err_h, err_c)

    print("KERNEL_OK")
</pallas_src>

<mosaic_0001>
module attributes {stable_mosaic.version = 11 : i64} {
  func.func @char_decoder_kernel(%arg0: memref<64x1xi32, #tpu.memory_space<vmem>>, %arg1: memref<32x128xf32, #tpu.memory_space<vmem>>, %arg2: memref<32x128xf32, #tpu.memory_space<vmem>>, %arg3: memref<16x32xf32, #tpu.memory_space<vmem>>, %arg4: memref<33x32xf32, #tpu.memory_space<vmem>>, %arg5: memref<64x32xf32, #tpu.memory_space<vmem>>, %arg6: memref<16x32xf32, #tpu.memory_space<vmem>>, %arg7: memref<64x32xf32, #tpu.memory_space<vmem>>) attributes {dimension_semantics = [], scalar_prefetch = 0 : i64, scratch_operands = 1 : i64, tpu.core_type = #tpu.core_type<tc>} {
    %c0 = arith.constant 0 : index
    %c0_0 = arith.constant 0 : index
    %0 = vector.load %arg0[%c0, %c0_0] : memref<64x1xi32, #tpu.memory_space<vmem>>, vector<64x1xi32>
    %1 = tpu.iota {dimensions = array<i32: 1>} : vector<64x32xi32>
    %2 = vector.broadcast %0 : vector<64x1xi32> to vector<64x32xi32>
    %3 = arith.cmpi eq, %2, %1 : vector<64x32xi32>
    %4 = arith.extui %3 : vector<64x32xi1> to vector<64x32xi32>
    %5 = arith.sitofp %4 : vector<64x32xi32> to vector<64x32xf32>
    %c0_1 = arith.constant 0 : index
    %c0_2 = arith.constant 0 : index
    %6 = vector.load %arg1[%c0_1, %c0_2] : memref<32x128xf32, #tpu.memory_space<vmem>>, vector<32x128xf32>
    %cst = arith.constant dense<0.000000e+00> : vector<64x128xf32>
    %7 = tpu.matmul %5, %6, %cst {dimension_numbers = #tpu.dot_dimension_numbers<[1], [0], [0], [1], [0, 0, 1, 1], [], []>} : vector<64x32xf32>, vector<32x128xf32>, vector<64x128xf32> -> vector<64x128xf32>
    %c0_3 = arith.constant 0 : index
    %c0_4 = arith.constant 0 : index
    %8 = vector.load %arg2[%c0_3, %c0_4] : memref<32x128xf32, #tpu.memory_space<vmem>>, vector<32x128xf32>
    %c0_5 = arith.constant 0 : index
    %c0_6 = arith.constant 0 : index
    %9 = vector.load %arg3[%c0_5, %c0_6] : memref<16x32xf32, #tpu.memory_space<vmem>>, vector<8x32xf32>
    %c8 = arith.constant 8 : index
    %c0_7 = arith.constant 0 : index
    %10 = vector.load %arg3[%c8, %c0_7] : memref<16x32xf32, #tpu.memory_space<vmem>>, vector<8x32xf32>
    %11 = vector.extract_strided_slice %7 {offsets = [0, 0], sizes = [8, 128], strides = [1, 1]} : vector<64x128xf32> to vector<8x128xf32>
    %cst_8 = arith.constant dense<0.000000e+00> : vector<8x128xf32>
    %12 = tpu.matmul %9, %8, %cst_8 {dimension_numbers = #tpu.dot_dimension_numbers<[1], [0], [0], [1], [0, 0, 1, 1], [], []>} : vector<8x32xf32>, vector<32x128xf32>, vector<8x128xf32> -> vector<8x128xf32>
    %13 = arith.addf %11, %12 : vector<8x128xf32>
    %14 = vector.extract_strided_slice %13 {offsets = [0, 0], sizes = [8, 96], strides = [1, 1]} : vector<8x128xf32> to vector<8x96xf32>
    %15 = arith.negf %14 : vector<8x96xf32>
    %16 = math.exp %15 : vector<8x96xf32>
    %cst_9 = arith.constant 1.000000e+00 : f32
    %17 = vector.broadcast %cst_9 : f32 to vector<8x96xf32>
    %18 = arith.addf %17, %16 : vector<8x96xf32>
    %19 = arith.divf %17, %18 : vector<8x96xf32>
    %20 = vector.extract_strided_slice %13 {offsets = [0, 96], sizes = [8, 32], strides = [1, 1]} : vector<8x128xf32> to vector<8x32xf32>
    %21 = math.tanh %20 : vector<8x32xf32>
    %22 = vector.extract_strided_slice %19 {offsets = [0, 0], sizes = [8, 32], strides = [1, 1]} : vector<8x96xf32> to vector<8x32xf32>
    %23 = vector.extract_strided_slice %19 {offsets = [0, 32], sizes = [8, 32], strides = [1, 1]} : vector<8x96xf32> to vector<8x32xf32>
    %24 = vector.extract_strided_slice %19 {offsets = [0, 64], sizes = [8, 32], strides = [1, 1]} : vector<8x96xf32> to vector<8x32xf32>
    %25 = arith.mulf %23, %10 : vector<8x32xf32>
    %26 = arith.mulf %22, %21 : vector<8x32xf32>
    %27 = arith.addf %25, %26 : vector<8x32xf32>
    %28 = math.tanh %27 : vector<8x32xf32>
    %29 = arith.mulf %24, %28 : vector<8x32xf32>
    %c0_10 = arith.constant 0 : index
    %c0_11 = arith.constant 0 : index
    %30 = vector.load %arg7[%c0_10, %c0_11] : memref<64x32xf32, #tpu.memory_space<vmem>>, vector<8x32xf32>
    tpu.vector_store %arg7[%c0_10, %c0_11], %29 {strides = array<i32>} : memref<64x32xf32, #tpu.memory_space<vmem>>, vector<8x32xf32>,
    %31 = vector.extract_strided_slice %7 {offsets = [8, 0], sizes = [8, 128], strides = [1, 1]} : vector<64x128xf32> to vector<8x128xf32>
    %cst_12 = arith.constant dense<0.000000e+00> : vector<8x128xf32>
    %32 = tpu.matmul %29, %8, %cst_12 {dimension_numbers = #tpu.dot_dimension_numbers<[1], [0], [0], [1], [0, 0, 1, 1], [], []>} : vector<8x32xf32>, vector<32x128xf32>, vector<8x128xf32> -> vector<8x128xf32>
    %33 = arith.addf %31, %32 : vector<8x128xf32>
    %34 = vector.extract_strided_slice %33 {offsets = [0, 0], sizes = [8, 96], strides = [1, 1]} : vector<8x128xf32> to vector<8x96xf32>
    %35 = arith.negf %34 : vector<8x96xf32>
    %36 = math.exp %35 : vector<8x96xf32>
    %cst_13 = arith.constant 1.000000e+00 : f32
    %37 = vector.broadcast %cst_13 : f32 to vector<8x96xf32>
    %38 = arith.addf %37, %36 : vector<8x96xf32>
    %39 = arith.divf %37, %38 : vector<8x96xf32>
    %40 = vector.extract_strided_slice %33 {offsets = [0, 96], sizes = [8, 32], strides = [1, 1]} : vector<8x128xf32> to vector<8x32xf32>
    %41 = math.tanh %40 : vector<8x32xf32>
    %42 = vector.extract_strided_slice %39 {offsets = [0, 0], sizes = [8, 32], strides = [1, 1]} : vector<8x96xf32> to vector<8x32xf32>
    %43 = vector.extract_strided_slice %39 {offsets = [0, 32], sizes = [8, 32], strides = [1, 1]} : vector<8x96xf32> to vector<8x32xf32>
    %44 = vector.extract_strided_slice %39 {offsets = [0, 64], sizes = [8, 32], strides = [1, 1]} : vector<8x96xf32> to vector<8x32xf32>
    %45 = arith.mulf %43, %27 : vector<8x32xf32>
    %46 = arith.mulf %42, %41 : vector<8x32xf32>
    %47 = arith.addf %45, %46 : vector<8x32xf32>
    %48 = math.tanh %47 : vector<8x32xf32>
    %49 = arith.mulf %44, %48 : vector<8x32xf32>
    %c8_14 = arith.constant 8 : index
    %c0_15 = arith.constant 0 : index
    %50 = vector.load %arg7[%c8_14, %c0_15] : memref<64x32xf32, #tpu.memory_space<vmem>>, vector<8x32xf32>
    tpu.vector_store %arg7[%c8_14, %c0_15], %49 {strides = array<i32>} : memref<64x32xf32, #tpu.memory_space<vmem>>, vector<8x32xf32>,
    %51 = vector.extract_strided_slice %7 {offsets = [16, 0], sizes = [8, 128], strides = [1, 1]} : vector<64x128xf32> to vector<8x128xf32>
    %cst_16 = arith.constant dense<0.000000e+00> : vector<8x128xf32>
    %52 = tpu.matmul %49, %8, %cst_16 {dimension_numbers = #tpu.dot_dimension_numbers<[1], [0], [0], [1], [0, 0, 1, 1], [], []>} : vector<8x32xf32>, vector<32x128xf32>, vector<8x128xf32> -> vector<8x128xf32>
    %53 = arith.addf %51, %52 : vector<8x128xf32>
    %54 = vector.extract_strided_slice %53 {offsets = [0, 0], sizes = [8, 96], strides = [1, 1]} : vector<8x128xf32> to vector<8x96xf32>
    %55 = arith.negf %54 : vector<8x96xf32>
    %56 = math.exp %55 : vector<8x96xf32>
    %cst_17 = arith.constant 1.000000e+00 : f32
    %57 = vector.broadcast %cst_17 : f32 to vector<8x96xf32>
    %58 = arith.addf %57, %56 : vector<8x96xf32>
    %59 = arith.divf %57, %58 : vector<8x96xf32>
    %60 = vector.extract_strided_slice %53 {offsets = [0, 96], sizes = [8, 32], strides = [1, 1]} : vector<8x128xf32> to vector<8x32xf32>
    %61 = math.tanh %60 : vector<8x32xf32>
    %62 = vector.extract_strided_slice %59 {offsets = [0, 0], sizes = [8, 32], strides = [1, 1]} : vector<8x96xf32> to vector<8x32xf32>
    %63 = vector.extract_strided_slice %59 {offsets = [0, 32], sizes = [8, 32], strides = [1, 1]} : vector<8x96xf32> to vector<8x32xf32>
    %64 = vector.extract_strided_slice %59 {offsets = [0, 64], sizes = [8, 32], strides = [1, 1]} : vector<8x96xf32> to vector<8x32xf32>
    %65 = arith.mulf %63, %47 : vector<8x32xf32>
    %66 = arith.mulf %62, %61 : vector<8x32xf32>
    %67 = arith.addf %65, %66 : vector<8x32xf32>
    %68 = math.tanh %67 : vector<8x32xf32>
    %69 = arith.mulf %64, %68 : vector<8x32xf32>
    %c16 = arith.constant 16 : index
    %c0_18 = arith.constant 0 : index
    %70 = vector.load %arg7[%c16, %c0_18] : memref<64x32xf32, #tpu.memory_space<vmem>>, vector<8x32xf32>
    tpu.vector_store %arg7[%c16, %c0_18], %69 {strides = array<i32>} : memref<64x32xf32, #tpu.memory_space<vmem>>, vector<8x32xf32>,
    %71 = vector.extract_strided_slice %7 {offsets = [24, 0], sizes = [8, 128], strides = [1, 1]} : vector<64x128xf32> to vector<8x128xf32>
    %cst_19 = arith.constant dense<0.000000e+00> : vector<8x128xf32>
    %72 = tpu.matmul %69, %8, %cst_19 {dimension_numbers = #tpu.dot_dimension_numbers<[1], [0], [0], [1], [0, 0, 1, 1], [], []>} : vector<8x32xf32>, vector<32x128xf32>, vector<8x128xf32> -> vector<8x128xf32>
    %73 = arith.addf %71, %72 : vector<8x128xf32>
    %74 = vector.extract_strided_slice %73 {offsets = [0, 0], sizes = [8, 96], strides = [1, 1]} : vector<8x128xf32> to vector<8x96xf32>
    %75 = arith.negf %74 : vector<8x96xf32>
    %76 = math.exp %75 : vector<8x96xf32>
    %cst_20 = arith.constant 1.000000e+00 : f32
    %77 = vector.broadcast %cst_20 : f32 to vector<8x96xf32>
    %78 = arith.addf %77, %76 : vector<8x96xf32>
    %79 = arith.divf %77, %78 : vector<8x96xf32>
    %80 = vector.extract_strided_slice %73 {offsets = [0, 96], sizes = [8, 32], strides = [1, 1]} : vector<8x128xf32> to vector<8x32xf32>
    %81 = math.tanh %80 : vector<8x32xf32>
    %82 = vector.extract_strided_slice %79 {offsets = [0, 0], sizes = [8, 32], strides = [1, 1]} : vector<8x96xf32> to vector<8x32xf32>
    %83 = vector.extract_strided_slice %79 {offsets = [0, 32], sizes = [8, 32], strides = [1, 1]} : vector<8x96xf32> to vector<8x32xf32>
    %84 = vector.extract_strided_slice %79 {offsets = [0, 64], sizes = [8, 32], strides = [1, 1]} : vector<8x96xf32> to vector<8x32xf32>
    %85 = arith.mulf %83, %67 : vector<8x32xf32>
    %86 = arith.mulf %82, %81 : vector<8x32xf32>
    %87 = arith.addf %85, %86 : vector<8x32xf32>
    %88 = math.tanh %87 : vector<8x32xf32>
    %89 = arith.mulf %84, %88 : vector<8x32xf32>
    %c24 = arith.constant 24 : index
    %c0_21 = arith.constant 0 : index
    %90 = vector.load %arg7[%c24, %c0_21] : memref<64x32xf32, #tpu.memory_space<vmem>>, vector<8x32xf32>
    tpu.vector_store %arg7[%c24, %c0_21], %89 {strides = array<i32>} : memref<64x32xf32, #tpu.memory_space<vmem>>, vector<8x32xf32>,
    %91 = vector.extract_strided_slice %7 {offsets = [32, 0], sizes = [8, 128], strides = [1, 1]} : vector<64x128xf32> to vector<8x128xf32>
    %cst_22 = arith.constant dense<0.000000e+00> : vector<8x128xf32>
    %92 = tpu.matmul %89, %8, %cst_22 {dimension_numbers = #tpu.dot_dimension_numbers<[1], [0], [0], [1], [0, 0, 1, 1], [], []>} : vector<8x32xf32>, vector<32x128xf32>, vector<8x128xf32> -> vector<8x128xf32>
    %93 = arith.addf %91, %92 : vector<8x128xf32>
    %94 = vector.extract_strided_slice %93 {offsets = [0, 0], sizes = [8, 96], strides = [1, 1]} : vector<8x128xf32> to vector<8x96xf32>
    %95 = arith.negf %94 : vector<8x96xf32>
    %96 = math.exp %95 : vector<8x96xf32>
    %cst_23 = arith.constant 1.000000e+00 : f32
    %97 = vector.broadcast %cst_23 : f32 to vector<8x96xf32>
    %98 = arith.addf %97, %96 : vector<8x96xf32>
    %99 = arith.divf %97, %98 : vector<8x96xf32>
    %100 = vector.extract_strided_slice %93 {offsets = [0, 96], sizes = [8, 32], strides = [1, 1]} : vector<8x128xf32> to vector<8x32xf32>
    %101 = math.tanh %100 : vector<8x32xf32>
    %102 = vector.extract_strided_slice %99 {offsets = [0, 0], sizes = [8, 32], strides = [1, 1]} : vector<8x96xf32> to vector<8x32xf32>
    %103 = vector.extract_strided_slice %99 {offsets = [0, 32], sizes = [8, 32], strides = [1, 1]} : vector<8x96xf32> to vector<8x32xf32>
    %104 = vector.extract_strided_slice %99 {offsets = [0, 64], sizes = [8, 32], strides = [1, 1]} : vector<8x96xf32> to vector<8x32xf32>
    %105 = arith.mulf %103, %87 : vector<8x32xf32>
    %106 = arith.mulf %102, %101 : vector<8x32xf32>
    %107 = arith.addf %105, %106 : vector<8x32xf32>
    %108 = math.tanh %107 : vector<8x32xf32>
    %109 = arith.mulf %104, %108 : vector<8x32xf32>
    %c32 = arith.constant 32 : index
    %c0_24 = arith.constant 0 : index
    %110 = vector.load %arg7[%c32, %c0_24] : memref<64x32xf32, #tpu.memory_space<vmem>>, vector<8x32xf32>
    tpu.vector_store %arg7[%c32, %c0_24], %109 {strides = array<i32>} : memref<64x32xf32, #tpu.memory_space<vmem>>, vector<8x32xf32>,
    %111 = vector.extract_strided_slice %7 {offsets = [40, 0], sizes = [8, 128], strides = [1, 1]} : vector<64x128xf32> to vector<8x128xf32>
    %cst_25 = arith.constant dense<0.000000e+00> : vector<8x128xf32>
    %112 = tpu.matmul %109, %8, %cst_25 {dimension_numbers = #tpu.dot_dimension_numbers<[1], [0], [0], [1], [0, 0, 1, 1], [], []>} : vector<8x32xf32>, vector<32x128xf32>, vector<8x128xf32> -> vector<8x128xf32>
    %113 = arith.addf %111, %112 : vector<8x128xf32>
    %114 = vector.extract_strided_slice %113 {offsets = [0, 0], sizes = [8, 96], strides = [1, 1]} : vector<8x128xf32> to vector<8x96xf32>
    %115 = arith.negf %114 : vector<8x96xf32>
    %116 = math.exp %115 : vector<8x96xf32>
    %cst_26 = arith.constant 1.000000e+00 : f32
    %117 = vector.broadcast %cst_26 : f32 to vector<8x96xf32>
    %118 = arith.addf %117, %116 : vector<8x96xf32>
    %119 = arith.divf %117, %118 : vector<8x96xf32>
    %120 = vector.extract_strided_slice %113 {offsets = [0, 96], sizes = [8, 32], strides = [1, 1]} : vector<8x128xf32> to vector<8x32xf32>
    %121 = math.tanh %120 : vector<8x32xf32>
    %122 = vector.extract_strided_slice %119 {offsets = [0, 0], sizes = [8, 32], strides = [1, 1]} : vector<8x96xf32> to vector<8x32xf32>
    %123 = vector.extract_strided_slice %119 {offsets = [0, 32], sizes = [8, 32], strides = [1, 1]} : vector<8x96xf32> to vector<8x32xf32>
    %124 = vector.extract_strided_slice %119 {offsets = [0, 64], sizes = [8, 32], strides = [1, 1]} : vector<8x96xf32> to vector<8x32xf32>
    %125 = arith.mulf %123, %107 : vector<8x32xf32>
    %126 = arith.mulf %122, %121 : vector<8x32xf32>
    %127 = arith.addf %125, %126 : vector<8x32xf32>
    %128 = math.tanh %127 : vector<8x32xf32>
    %129 = arith.mulf %124, %128 : vector<8x32xf32>
    %c40 = arith.constant 40 : index
    %c0_27 = arith.constant 0 : index
    %130 = vector.load %arg7[%c40, %c0_27] : memref<64x32xf32, #tpu.memory_space<vmem>>, vector<8x32xf32>
    tpu.vector_store %arg7[%c40, %c0_27], %129 {strides = array<i32>} : memref<64x32xf32, #tpu.memory_space<vmem>>, vector<8x32xf32>,
    %131 = vector.extract_strided_slice %7 {offsets = [48, 0], sizes = [8, 128], strides = [1, 1]} : vector<64x128xf32> to vector<8x128xf32>
    %cst_28 = arith.constant dense<0.000000e+00> : vector<8x128xf32>
    %132 = tpu.matmul %129, %8, %cst_28 {dimension_numbers = #tpu.dot_dimension_numbers<[1], [0], [0], [1], [0, 0, 1, 1], [], []>} : vector<8x32xf32>, vector<32x128xf32>, vector<8x128xf32> -> vector<8x128xf32>
    %133 = arith.addf %131, %132 : vector<8x128xf32>
    %134 = vector.extract_strided_slice %133 {offsets = [0, 0], sizes = [8, 96], strides = [1, 1]} : vector<8x128xf32> to vector<8x96xf32>
    %135 = arith.negf %134 : vector<8x96xf32>
    %136 = math.exp %135 : vector<8x96xf32>
    %cst_29 = arith.constant 1.000000e+00 : f32
    %137 = vector.broadcast %cst_29 : f32 to vector<8x96xf32>
    %138 = arith.addf %137, %136 : vector<8x96xf32>
    %139 = arith.divf %137, %138 : vector<8x96xf32>
    %140 = vector.extract_strided_slice %133 {offsets = [0, 96], sizes = [8, 32], strides = [1, 1]} : vector<8x128xf32> to vector<8x32xf32>
    %141 = math.tanh %140 : vector<8x32xf32>
    %142 = vector.extract_strided_slice %139 {offsets = [0, 0], sizes = [8, 32], strides = [1, 1]} : vector<8x96xf32> to vector<8x32xf32>
    %143 = vector.extract_strided_slice %139 {offsets = [0, 32], sizes = [8, 32], strides = [1, 1]} : vector<8x96xf32> to vector<8x32xf32>
    %144 = vector.extract_strided_slice %139 {offsets = [0, 64], sizes = [8, 32], strides = [1, 1]} : vector<8x96xf32> to vector<8x32xf32>
    %145 = arith.mulf %143, %127 : vector<8x32xf32>
    %146 = arith.mulf %142, %141 : vector<8x32xf32>
    %147 = arith.addf %145, %146 : vector<8x32xf32>
    %148 = math.tanh %147 : vector<8x32xf32>
    %149 = arith.mulf %144, %148 : vector<8x32xf32>
    %c48 = arith.constant 48 : index
    %c0_30 = arith.constant 0 : index
    %150 = vector.load %arg7[%c48, %c0_30] : memref<64x32xf32, #tpu.memory_space<vmem>>, vector<8x32xf32>
    tpu.vector_store %arg7[%c48, %c0_30], %149 {strides = array<i32>} : memref<64x32xf32, #tpu.memory_space<vmem>>, vector<8x32xf32>,
    %151 = vector.extract_strided_slice %7 {offsets = [56, 0], sizes = [8, 128], strides = [1, 1]} : vector<64x128xf32> to vector<8x128xf32>
    %cst_31 = arith.constant dense<0.000000e+00> : vector<8x128xf32>
    %152 = tpu.matmul %149, %8, %cst_31 {dimension_numbers = #tpu.dot_dimension_numbers<[1], [0], [0], [1], [0, 0, 1, 1], [], []>} : vector<8x32xf32>, vector<32x128xf32>, vector<8x128xf32> -> vector<8x128xf32>
    %153 = arith.addf %151, %152 : vector<8x128xf32>
    %154 = vector.extract_strided_slice %153 {offsets = [0, 0], sizes = [8, 96], strides = [1, 1]} : vector<8x128xf32> to vector<8x96xf32>
    %155 = arith.negf %154 : vector<8x96xf32>
    %156 = math.exp %155 : vector<8x96xf32>
    %cst_32 = arith.constant 1.000000e+00 : f32
    %157 = vector.broadcast %cst_32 : f32 to vector<8x96xf32>
    %158 = arith.addf %157, %156 : vector<8x96xf32>
    %159 = arith.divf %157, %158 : vector<8x96xf32>
    %160 = vector.extract_strided_slice %153 {offsets = [0, 96], sizes = [8, 32], strides = [1, 1]} : vector<8x128xf32> to vector<8x32xf32>
    %161 = math.tanh %160 : vector<8x32xf32>
    %162 = vector.extract_strided_slice %159 {offsets = [0, 0], sizes = [8, 32], strides = [1, 1]} : vector<8x96xf32> to vector<8x32xf32>
    %163 = vector.extract_strided_slice %159 {offsets = [0, 32], sizes = [8, 32], strides = [1, 1]} : vector<8x96xf32> to vector<8x32xf32>
    %164 = vector.extract_strided_slice %159 {offsets = [0, 64], sizes = [8, 32], strides = [1, 1]} : vector<8x96xf32> to vector<8x32xf32>
    %165 = arith.mulf %163, %147 : vector<8x32xf32>
    %166 = arith.mulf %162, %161 : vector<8x32xf32>
    %167 = arith.addf %165, %166 : vector<8x32xf32>
    %168 = math.tanh %167 : vector<8x32xf32>
    %169 = arith.mulf %164, %168 : vector<8x32xf32>
    %c56 = arith.constant 56 : index
    %c0_33 = arith.constant 0 : index
    %170 = vector.load %arg7[%c56, %c0_33] : memref<64x32xf32, #tpu.memory_space<vmem>>, vector<8x32xf32>
    tpu.vector_store %arg7[%c56, %c0_33], %169 {strides = array<i32>} : memref<64x32xf32, #tpu.memory_space<vmem>>, vector<8x32xf32>,
    %c0_34 = arith.constant 0 : index
    %c0_35 = arith.constant 0 : index
    %171 = vector.load %arg6[%c0_34, %c0_35] : memref<16x32xf32, #tpu.memory_space<vmem>>, vector<8x32xf32>
    tpu.vector_store %arg6[%c0_34, %c0_35], %169 {strides = array<i32>} : memref<16x32xf32, #tpu.memory_space<vmem>>, vector<8x32xf32>,
    %c8_36 = arith.constant 8 : index
    %c0_37 = arith.constant 0 : index
    %172 = vector.load %arg6[%c8_36, %c0_37] : memref<16x32xf32, #tpu.memory_space<vmem>>, vector<8x32xf32>
    tpu.vector_store %arg6[%c8_36, %c0_37], %167 {strides = array<i32>} : memref<16x32xf32, #tpu.memory_space<vmem>>, vector<8x32xf32>,
    %c0_38 = arith.constant 0 : index
    %c0_39 = arith.constant 0 : index
    %173 = vector.load %arg7[%c0_38, %c0_39] : memref<64x32xf32, #tpu.memory_space<vmem>>, vector<64x32xf32>
    %c0_40 = arith.constant 0 : index
    %c0_41 = arith.constant 0 : index
    %174 = vector.load %arg4[%c0_40, %c0_41] : memref<33x32xf32, #tpu.memory_space<vmem>>, vector<32x32xf32>
    %cst_42 = arith.constant dense<0.000000e+00> : vector<64x32xf32>
    %175 = tpu.matmul %173, %174, %cst_42 {dimension_numbers = #tpu.dot_dimension_numbers<[1], [0], [0], [1], [0, 0, 1, 1], [], []>} : vector<64x32xf32>, vector<32x32xf32>, vector<64x32xf32> -> vector<64x32xf32>
    %c32_43 = arith.constant 32 : index
    %c0_44 = arith.constant 0 : index
    %176 = vector.load %arg4[%c32_43, %c0_44] : memref<33x32xf32, #tpu.memory_space<vmem>>, vector<1x32xf32>
    %177 = vector.broadcast %176 : vector<1x32xf32> to vector<64x32xf32>
    %178 = arith.addf %175, %177 : vector<64x32xf32>
    %c0_45 = arith.constant 0 : index
    %c0_46 = arith.constant 0 : index
    %179 = vector.load %arg5[%c0_45, %c0_46] : memref<64x32xf32, #tpu.memory_space<vmem>>, vector<64x32xf32>
    tpu.vector_store %arg5[%c0_45, %c0_46], %178 {strides = array<i32>} : memref<64x32xf32, #tpu.memory_space<vmem>>, vector<64x32xf32>,
    return
  }
}

</mosaic_0001>

<bundles_post_ra>
// kernel: tpu_custom_call.1
= control target key start
LH: loop header
LB: loop body
LE: loop exit
PB: predicated region body
PF: predicated region fallthrough
CT: control target
= control target key end

     0   :  { %v1623_v2 = vmov 0   ;;  %s1944_s0 = inlined_call_operand.vmem [shape: s32[64,1], index: 0, kind: input, shape index: {}]   ;;  %s1945_s1 = inlined_call_operand.vmem [shape: f32[32,128], index: 1, kind: input, shape index: {}]   ;;  %s1946_s2 = inlined_call_operand.vmem [shape: f32[32,128], index: 2, kind: input, shape index: {}]   ;;  %s1947_s3 = inlined_call_operand.vmem [shape: f32[16,32], index: 3, kind: input, shape index: {}]   ;;  %s1948_s4 = inlined_call_operand.vmem [shape: f32[33,32], index: 4, kind: input, shape index: {}]   ;;  %s1949_s5 = inlined_call_operand.vmem [shape: f32[64,32], index: 5, kind: output, shape index: {0}]   ;;  %s1950_s6 = inlined_call_operand.hbm [shape: f32[16,32], index: 6, kind: output, shape index: {1}]  }
   0x1   :  { %v29_v0 = vld [vmem:[%s1944_s0 + $0x30] sm:$0xff]  ;;  %v27_v1 = vld [vmem:[%s1944_s0 + $0x20] sm:$0xff]  ;;  %1534 = vset.pattern.permute.xlu1 %v1623_v2  ;;  %1533 = vset.pattern.permute.xlu0 %v1623_v2  ;;  %v30_v3 = vld [vmem:[%s1944_s0 + $0x38] sm:$0xff] }
   0x2   :  { %52 = vperm.xlu1 %1534, %v29_v0   ;;  %46 = vperm.xlu0 %1533, %v27_v1   ;;  %v81_v4 = vld [vmem:[%s1945_s1] sm:$0xff]  ;;  %v82_v5 = vld [vmem:[%s1945_s1 + $0x8] sm:$0xff]  ;;  %v83_v6 = vld [vmem:[%s1945_s1 + $0x10] sm:$0xff] }
   0x3   :  { %v28_v7 = vld [vmem:[%s1944_s0 + $0x28] sm:$0xff]  ;;  %v1455_v8 = vpack.c.bf16 %v82_v5, %v81_v4  ;;  %v84_v9 = vld [vmem:[%s1945_s1 + $0x18] sm:$0xff] }
   0x4   :  { %12 = vsyncpa [#allocation4], 0  ;;  %v1459_v10 = vpack.c.bf16 %v84_v9, %v83_v6  ;;  %v24_v11 = vld [vmem:[%s1944_s0 + $0x8] sm:$0xff]  ;;  %v23_v12 = vld [vmem:[%s1944_s0] sm:$0xff]  ;;  %v1624_v13 = vmov 0.0|0.0   ;;  %s1625_s18 = smov 32   ;;  %v31_v15 = vlaneseq }
   0x5   :  { %1519 = vmatprep.subr.bf16.mxu1 %v1455_v8  ;;  %1456 = vmatprep.subr.bf16.mxu0 %v1455_v8  ;;  %v220_v14 = vld [vmem:[%s1947_s3 + $0x8] sm:$0xff]  ;;  %vm85_vm0 = vcmask 261120   ;;  %v215_v19 = vld [vmem:[%s1946_s2] sm:$0xff]  ;;  %v1626_v21 = vmov 0.0   ;;  %v217_v26 = vld [vmem:[%s1946_s2 + $0x10] sm:$0xff]  ;;  %vm1627_vm7 = vmmov 0  }
   0x6   :  { %55 = vperm.xlu1 %1534, %v30_v3   ;;  %49 = vperm.xlu0 %1533, %v28_v7   ;;  %v1704_v16 = vand.u32 127, %v31_v15  ;;  %v216_v20 = vld [vmem:[%s1946_s2 + $0x8] sm:$0xff]  ;;  %v218_v27 = vld [vmem:[%s1946_s2 + $0x18] sm:$0xff]  ;;  %v219_v36 = vld [vmem:[%s1947_s3] sm:$0xff]  ;;  %s1628_s3 = smov 64   ;;  %s1629_s27 = smov 96  }
   0x7   :  { %1521 = vmatpush3.bf16.msra.mxu1 %v1455_v8  ;;  %1458 = vmatpush3.bf16.msra.mxu0 %v1455_v8  ;;  %v1716_v25 = vpack.c.bf16 %v216_v20, %v215_v19  ;;  %v1731_v32 = vpack.c.bf16 %v218_v27, %v217_v26  ;;  %v25_v7 = vld [vmem:[%s1944_s0 + $0x10] sm:$0xff]  ;;  %s1630_s28 = smov [#allocation3]  }
   0x8   :  { %1520 = vmatprep.subr.bf16.mxu1 %v1459_v10  ;;  %1460 = vmatprep.subr.bf16.mxu0 %v1459_v10  ;;  %s1209_s29 = sshll.u32 %s1630_s28, 4  ;;  %s1210_s29 = int_to_ptr.vmem [resolvable:$true] %s1209_s29 }
   0x9   :  { %p1604_p1 = scmp.lt.s32.totalorder %s1210_s29, %s1210_s29 }
   0xa   :  { %37 = vperm.xlu1 %1534, %v24_v11   ;;  %34 = vperm.xlu0 %1533, %v23_v12   ;;  %v26_v12 = vld [vmem:[%s1944_s0 + $0x18] sm:$0xff] }
   0xb   :  { %1522 = vmatpush3.bf16.msra.mxu1 %v1459_v10  ;;  %1462 = vmatpush3.bf16.msra.mxu0 %v1459_v10 }
   0xc   :  { %1463 = vmatprep.subr.bf16.mxu1 %v1624_v13  ;;  %1475 = vmatprep.subr.bf16.mxu0 %v1624_v13 }
   0xe   :  { %303 = vrot.lane.b32.xlu1 %v220_v14, %s1625_s18 }
  0x81   :  { %v53_v17 = vpop.permute.xlu1 %52  ;;  %v47_v18 = vpop.permute.xlu0 %46 }
  0x82   :  { %vm61_vm1 = vcmp.eq.s32.totalorder %v47_v18, %v1704_v16  ;;  %vm63_vm2 = vcmp.eq.s32.totalorder %v53_v17, %v1704_v16 }
  0x83   :  { %v1226_v22 = vsel %vm61_vm1, 1.0, %v1626_v21  ;;  %v1228_v29 = vsel %vm63_vm2, 1.0, %v1626_v21 }
  0x84   :  { %1341 = vmatprep.mubr.msk.f32.mxu1 %vm85_vm0, %v1226_v22 }
  0x85   :  { %v56_v23 = vpop.permute.xlu1 %55  ;;  %v50_v24 = vpop.permute.xlu0 %49 }
  0x86   :  { %vm62_vm3 = vcmp.eq.s32.totalorder %v50_v24, %v1704_v16  ;;  %vm64_vm4 = vcmp.eq.s32.totalorder %v56_v23, %v1704_v16 }
  0x87   :  { %v1227_v28 = vsel %vm62_vm3, 1.0, %v1626_v21  ;;  %v1229_v33 = vsel %vm64_vm4, 1.0, %v1626_v21 }
  0x88   :  { %1342 = vmatmul.mubr.msk.f32.vlgmr.msra.gmra.mrb[0].mxu1 %vm85_vm0, %v1227_v28 }
  0x89   :  { %1465 = vmatpush3.bf16.msra.mxu1 %v1716_v25  ;;  %1344 = vmatprep.mubr.msk.f32.mxu1 %vm85_vm0, %v1228_v29  ;;  %v38_v30 = vpop.permute.xlu1 %37  ;;  %v35_v31 = vpop.permute.xlu0 %34 }
  0x8a   :  { %vm58_vm5 = vcmp.eq.s32.totalorder %v38_v30, %v1704_v16  ;;  %vm57_vm6 = vcmp.eq.s32.totalorder %v35_v31, %v1704_v16  ;;  %1466 = vmatprep.subr.bf16.mxu1 %v1624_v13 }
  0x8b   :  { %v1223_v34 = vsel %vm58_vm5, 1.0, %v1626_v21  ;;  %v1222_v35 = vsel %vm57_vm6, 1.0, %v1626_v21 }
  0x8c   :  { %1335 = vmatprep.mubr.msk.f32.mxu0 %vm85_vm0, %v1222_v35  ;;  %1345 = vmatmul.mubr.msk.f32.gmra.mrb[2].mxu1 %vm85_vm0, %v1229_v33 }
  0x8d   :  { %1468 = vmatpush3.bf16.msra.mxu1 %v1731_v32  ;;  %1336 = vmatmul.mubr.msk.f32.vlgmr.msra.gmra.mrb[0].mxu0 %vm85_vm0, %v1223_v34  ;;  %v304_v53 = vpop.permute.xlu1 %303 }
  0x8e   :  { %1355 = vmatprep.mubr.msk.f32.mxu1 %vm1627_vm7, %v1626_v21  ;;  %1469 = vmatprep.subr.bf16.mxu1 %v1624_v13 }
  0x8f   :  { %1477 = vmatpush3.bf16.msra.mxu0 %v1716_v25 }
  0x90   :  { %1356 = vmatmul.mubr.msk.f32.vlgmr.msra.gmra.mrb[4].mxu1 %vm85_vm0, %v219_v36  ;;  %1478 = vmatprep.subr.bf16.mxu0 %v1624_v13 }
  0x91   :  { %1471 = vmatpush3.bf16.msra.mxu1 %v1716_v25  ;;  %1366 = vmatprep.mubr.msk.f32.mxu1 %vm1627_vm7, %v1626_v21 }
  0x92   :  { %1472 = vmatprep.subr.bf16.mxu1 %v1624_v13 }
  0x93   :  { %1480 = vmatpush3.bf16.msra.mxu0 %v1731_v32 }
  0x94   :  { %1487 = vmatprep.subr.bf16.mxu0 %v1624_v13 }
  0x95   :  { %1474 = vmatpush3.bf16.msra.mxu1 %v1731_v32 }
  0x96   :  { %1481 = vmatprep.subr.bf16.mxu1 %v1624_v13 }
 0x15b   :  { %v1760_v37 = vpop.f32.mrb[0].mxu1 }
 0x15c   :  { %v1762_v38 = vpop.f32.mrb[1].mxu1 }
 0x15f   :  { %v1764_v39 = vpop.f32.mrb[2].mxu1 }
 0x160   :  { %v1337_v40 = vpop.f32.mrb[0].mxu0  ;;  %v1766_v41 = vpop.f32.mrb[3].mxu1 }
 0x161   :  { %v176_v42 = vpop.f32.mrb[1].mxu0 }
 0x163   :  { %v290_v43 = vpop.f32.mrb[4].mxu1 }
 0x164   :  { %v294_v44 = vadd.f32 %v290_v43, %v176_v42  ;;  %v1357_v45 = vpop.f32.mrb[5].mxu1 }
 0x166   :  { %1535 = vtanh.f32 %v294_v44  ;;  %v1239_v47 = vmul.f32 -1.442695, %v294_v44 }
 0x168   :  { %1537 = vpow2.f32 %v1239_v47 }
 0x170   :  { %v1536_v46 = vpop.eup %1535 }
 0x171   :  { %308 = vrot.lane.b32.xlu0 %v1536_v46, %s1625_s18 }
 0x172   :  { %v1538_v48 = vpop.eup %1537 }
 0x173   :  { %v298_v49 = vadd.f32 1.0, %v1538_v48 }
 0x175   :  { %1539 = vrcp.f32 %v298_v49 }
 0x17f   :  { %v1540_v50 = vpop.eup %1539 }
 0x180   :  { %v306_v54 = vmul.f32 %v1540_v50, %v304_v53 }
 0x1e3   :  { %v309_v51 = vpop.permute.xlu0 %308 }
 0x1e4   :  { %v311_v52 = vmul.f32 %v1540_v50, %v309_v51 }
 0x1e6   :  { %313 = vrot.lane.b32.xlu0 %v311_v52, %s1625_s18 }
 0x258   :  { %v314_v55 = vpop.permute.xlu0 %313 }
 0x259   :  { %v316_v56 = vadd.f32 %v314_v55, %v306_v54 }
 0x25b   :  { %1541 = vtanh.f32 %v316_v56 }
 0x265   :  { %v1542_v57 = vpop.eup %1541 }
 0x266   :  { %319 = vrot.lane.b32.xlu1 %v1542_v57, %s1625_s18 }
 0x2d8   :  { %v320_v58 = vpop.permute.xlu1 %319 }
 0x2d9   :  { %v322_v59 = vmul.f32 %v1540_v50, %v320_v58 }
 0x2db   :  { %324 = vrot.lane.b32.xlu0 %v322_v59, %s1628_s3 }
 0x34d   :  { %v325_v60 = vpop.permute.xlu0 %324 }
 0x34e   :  { %327 = vst.msk [vmem:[#allocation2] sm:$0xff] %vm85_vm0, %v325_v60  ;;  %1367 = vmatmul.mubr.msk.f32.vlgmr.msra.gmra.mrb[6].mxu1 %vm85_vm0, %v325_v60 }
 0x34f   :  { %1483 = vmatpush3.bf16.msra.mxu1 %v1716_v25  ;;  %1388 = vmatprep.mubr.msk.f32.mxu1 %vm1627_vm7, %v1626_v21 }
 0x350   :  { %1484 = vmatprep.subr.bf16.mxu1 %v1624_v13 }
 0x353   :  { %1486 = vmatpush3.bf16.msra.mxu1 %v1731_v32 }
 0x354   :  { %1493 = vmatprep.subr.bf16.mxu1 %v1624_v13 }
 0x421   :  { %v396_v61 = vpop.f32.mrb[6].mxu1 }
 0x422   :  { %v400_v62 = vadd.f32 %v1337_v40, %v396_v61  ;;  %v1368_v63 = vpop.f32.mrb[7].mxu1 }
 0x424   :  { %1543 = vtanh.f32 %v400_v62  ;;  %v1241_v1 = vmul.f32 -1.442695, %v400_v62 }
 0x426   :  { %1545 = vpow2.f32 %v1241_v1 }
 0x42e   :  { %v1544_v0 = vpop.eup %1543 }
 0x42f   :  { %410 = vrot.lane.b32.xlu1 %v1544_v0, %s1625_s18 }
 0x430   :  { %v1546_v2 = vpop.eup %1545 }
 0x431   :  { %v404_v3 = vadd.f32 1.0, %v1546_v2 }
 0x433   :  { %1547 = vrcp.f32 %v404_v3 }
 0x43d   :  { %v1548_v4 = vpop.eup %1547 }
 0x43e   :  { %v408_v8 = vmul.f32 %v1548_v4, %v316_v56 }
 0x4a1   :  { %v411_v5 = vpop.permute.xlu1 %410 }
 0x4a2   :  { %v413_v6 = vmul.f32 %v1548_v4, %v411_v5 }
 0x4a4   :  { %415 = vrot.lane.b32.xlu0 %v413_v6, %s1625_s18 }
 0x4a8   :  { %40 = vperm.xlu0 %1533, %v25_v7  }
 0x516   :  { %v416_v9 = vpop.permute.xlu0 %415 }
 0x517   :  { %v418_v10 = vadd.f32 %v416_v9, %v408_v8 }
 0x519   :  { %1549 = vtanh.f32 %v418_v10 }
 0x523   :  { %v1550_v11 = vpop.eup %1549 }
 0x524   :  { %421 = vrot.lane.b32.xlu1 %v1550_v11, %s1625_s18 }
 0x527   :  { %v41_v14 = vpop.permute.xlu0 %40 }
 0x528   :  { %vm59_vm8 = vcmp.eq.s32.totalorder %v41_v14, %v1704_v16  ;;  %43 = vperm.xlu1 %1534, %v26_v12  }
 0x529   :  { %v1224_v15 = vsel %vm59_vm8, 1.0, %v1626_v21 }
 0x52a   :  { %1338 = vmatprep.mubr.msk.f32.mxu0 %vm85_vm0, %v1224_v15 }
 0x596   :  { %v422_v17 = vpop.permute.xlu1 %421 }
 0x597   :  { %v424_v18 = vmul.f32 %v1548_v4, %v422_v17 }
 0x599   :  { %426 = vrot.lane.b32.xlu0 %v424_v18, %s1628_s3 }
 0x5a7   :  { %v44_v19 = vpop.permute.xlu1 %43 }
 0x5a8   :  { %vm60_vm9 = vcmp.eq.s32.totalorder %v44_v19, %v1704_v16 }
 0x5a9   :  { %v1225_v20 = vsel %vm60_vm9, 1.0, %v1626_v21 }
 0x5aa   :  { %1339 = vmatmul.mubr.msk.f32.gmra.mrb[2].mxu0 %vm85_vm0, %v1225_v20 }
 0x5ab   :  { %1377 = vmatprep.mubr.msk.f32.mxu0 %vm1627_vm7, %v1626_v21 }
 0x60b   :  { %v427_v22 = vpop.permute.xlu0 %426 }
 0x60c   :  { %429 = vst.msk [vmem:[#allocation2 + $0x8] sm:$0xff] %vm85_vm0, %v427_v22  ;;  %1378 = vmatmul.mubr.msk.f32.vlgmr.msra.gmra.mrb[4].mxu0 %vm85_vm0, %v427_v22 }
 0x60d   :  { %1489 = vmatpush3.bf16.msra.mxu0 %v1716_v25  ;;  %1399 = vmatprep.mubr.msk.f32.mxu0 %vm1627_vm7, %v1626_v21 }
 0x60e   :  { %1490 = vmatprep.subr.bf16.mxu0 %v1624_v13 }
 0x611   :  { %1492 = vmatpush3.bf16.msra.mxu0 %v1731_v32 }
 0x612   :  { %1499 = vmatprep.subr.bf16.mxu0 %v1624_v13 }
 0x67d   :  { %v1340_v16 = vpop.f32.mrb[2].mxu0 }
 0x67e   :  { %v186_v23 = vpop.f32.mrb[3].mxu0 }
 0x6df   :  { %v498_v24 = vpop.f32.mrb[4].mxu0 }
 0x6e0   :  { %v502_v26 = vadd.f32 %v498_v24, %v186_v23  ;;  %v1379_v27 = vpop.f32.mrb[5].mxu0 }
 0x6e2   :  { %1551 = vtanh.f32 %v502_v26  ;;  %v1243_v29 = vmul.f32 -1.442695, %v502_v26 }
 0x6e4   :  { %1553 = vpow2.f32 %v1243_v29 }
 0x6ec   :  { %v1552_v28 = vpop.eup %1551 }
 0x6ed   :  { %512 = vrot.lane.b32.xlu1 %v1552_v28, %s1625_s18  ;;  %v1057_v28 = vld [vmem:[%s1948_s4 + $0x8] sm:$0xff] }
 0x6ee   :  { %v1554_v30 = vpop.eup %1553 }
 0x6ef   :  { %v506_v31 = vadd.f32 1.0, %v1554_v30 }
 0x6f1   :  { %1555 = vrcp.f32 %v506_v31 }
 0x6fb   :  { %v1556_v33 = vpop.eup %1555 }
 0x6fc   :  { %v510_v36 = vmul.f32 %v1556_v33, %v418_v10 }
 0x75f   :  { %v513_v34 = vpop.permute.xlu1 %512 }
 0x760   :  { %v515_v35 = vmul.f32 %v1556_v33, %v513_v34  ;;  %v1058_v34 = vld [vmem:[%s1948_s4 + $0x10] sm:$0xff] }
 0x762   :  { %517 = vrot.lane.b32.xlu0 %v515_v35, %s1625_s18  ;;  %v1059_v35 = vld [vmem:[%s1948_s4 + $0x18] sm:$0xff] }
 0x7d4   :  { %v518_v40 = vpop.permute.xlu0 %517 }
 0x7d5   :  { %v520_v42 = vadd.f32 %v518_v40, %v510_v36  ;;  %v1515_v36 = vpack.c.bf16 %v1059_v35, %v1058_v34 }
 0x7d7   :  { %1557 = vtanh.f32 %v520_v42 }
 0x7e1   :  { %v1558_v43 = vpop.eup %1557 }
 0x7e2   :  { %523 = vrot.lane.b32.xlu1 %v1558_v43, %s1625_s18  ;;  %v1049_v43 = vld [vmem:[#allocation2 + $0x8] sm:$0xff] }
 0x854   :  { %v524_v44 = vpop.permute.xlu1 %523 }
 0x855   :  { %v526_v45 = vmul.f32 %v1556_v33, %v524_v44 }
 0x857   :  { %528 = vrot.lane.b32.xlu0 %v526_v45, %s1628_s3 }
 0x8c9   :  { %v529_v46 = vpop.permute.xlu0 %528 }
 0x8ca   :  { %531 = vst.msk [vmem:[#allocation2 + $0x10] sm:$0xff] %vm85_vm0, %v529_v46  ;;  %1389 = vmatmul.mubr.msk.f32.vlgmr.msra.gmra.mrb[8].mxu1 %vm85_vm0, %v529_v46 }
 0x8cb   :  { %1495 = vmatpush3.bf16.msra.mxu1 %v1716_v25  ;;  %1410 = vmatprep.mubr.msk.f32.mxu1 %vm1627_vm7, %v1626_v21 }
 0x8cc   :  { %1496 = vmatprep.subr.bf16.mxu1 %v1624_v13 }
 0x8cf   :  { %1498 = vmatpush3.bf16.msra.mxu1 %v1731_v32 }
 0x8d0   :  { %1505 = vmatprep.subr.bf16.mxu1 %v1624_v13 }
 0x8d1   :  { %v1050_v44 = vld [vmem:[#allocation2 + $0x10] sm:$0xff] }
 0x99d   :  { %v600_v47 = vpop.f32.mrb[8].mxu1 }
 0x99e   :  { %v604_v48 = vadd.f32 %v1340_v16, %v600_v47  ;;  %v1390_v49 = vpop.f32.mrb[9].mxu1 }
 0x9a0   :  { %1559 = vtanh.f32 %v604_v48  ;;  %v1245_v51 = vmul.f32 -1.442695, %v604_v48 }
 0x9a2   :  { %1561 = vpow2.f32 %v1245_v51  ;;  %v1873_v51 = vld [vmem:[%s1948_s4 + $0x20] ss:$0 sm:$0xff] }
 0x9aa   :  { %v1560_v50 = vpop.eup %1559 }
 0x9ab   :  { %614 = vrot.lane.b32.xlu1 %v1560_v50, %s1625_s18 }
 0x9ac   :  { %v1562_v52 = vpop.eup %1561 }
 0x9ad   :  { %v608_v53 = vadd.f32 1.0, %v1562_v52 }
 0x9af   :  { %1563 = vrcp.f32 %v608_v53 }
 0x9b9   :  { %v1564_v54 = vpop.eup %1563 }
 0x9ba   :  { %v612_v57 = vmul.f32 %v1564_v54, %v520_v42  ;;  %v1048_v42 = vld [vmem:[#allocation2] sm:$0xff] }
 0xa1d   :  { %v615_v55 = vpop.permute.xlu1 %614 }
 0xa1e   :  { %v617_v56 = vmul.f32 %v1564_v54, %v615_v55 }
 0xa20   :  { %619 = vrot.lane.b32.xlu0 %v617_v56, %s1625_s18 }
 0xa92   :  { %v620_v58 = vpop.permute.xlu0 %619 }
 0xa93   :  { %v622_v59 = vadd.f32 %v620_v58, %v612_v57 }
 0xa95   :  { %1565 = vtanh.f32 %v622_v59 }
 0xa9f   :  { %v1566_v60 = vpop.eup %1565 }
 0xaa0   :  { %625 = vrot.lane.b32.xlu1 %v1566_v60, %s1625_s18 }
 0xb12   :  { %v626_v61 = vpop.permute.xlu1 %625 }
 0xb13   :  { %v628_v62 = vmul.f32 %v1564_v54, %v626_v61 }
 0xb15   :  { %630 = vrot.lane.b32.xlu0 %v628_v62, %s1628_s3 }
 0xb87   :  { %v631_v63 = vpop.permute.xlu0 %630 }
 0xb88   :  { %633 = vst.msk [vmem:[#allocation2 + $0x18] sm:$0xff] %vm85_vm0, %v631_v63  ;;  %1400 = vmatmul.mubr.msk.f32.vlgmr.msra.gmra.mrb[6].mxu0 %vm85_vm0, %v631_v63 }
 0xb89   :  { %1501 = vmatpush3.bf16.msra.mxu0 %v1716_v25  ;;  %1421 = vmatprep.mubr.msk.f32.mxu0 %vm1627_vm7, %v1626_v21 }
 0xb8a   :  { %1502 = vmatprep.subr.bf16.mxu0 %v1624_v13 }
 0xb8d   :  { %1504 = vmatpush3.bf16.msra.mxu0 %v1731_v32 }
 0xb8f   :  { %v1051_v45 = vld [vmem:[#allocation2 + $0x18] sm:$0xff] }
 0xc5b   :  { %v702_v0 = vpop.f32.mrb[6].mxu0 }
 0xc5c   :  { %v706_v1 = vadd.f32 %v702_v0, %v1762_v38  ;;  %v1401_v2 = vpop.f32.mrb[7].mxu0 }
 0xc5e   :  { %1567 = vtanh.f32 %v706_v1  ;;  %v1247_v4 = vmul.f32 -1.442695, %v706_v1 }
 0xc60   :  { %1569 = vpow2.f32 %v1247_v4 }
 0xc68   :  { %v1568_v3 = vpop.eup %1567 }
 0xc69   :  { %716 = vrot.lane.b32.xlu1 %v1568_v3, %s1625_s18 }
 0xc6a   :  { %v1570_v5 = vpop.eup %1569 }
 0xc6b   :  { %v710_v6 = vadd.f32 1.0, %v1570_v5 }
 0xc6d   :  { %1571 = vrcp.f32 %v710_v6 }
 0xc77   :  { %v1572_v7 = vpop.eup %1571 }
 0xc78   :  { %v714_v10 = vmul.f32 %v1572_v7, %v622_v59 }
 0xcdb   :  { %v717_v8 = vpop.permute.xlu1 %716 }
 0xcdc   :  { %v719_v9 = vmul.f32 %v1572_v7, %v717_v8 }
 0xcde   :  { %721 = vrot.lane.b32.xlu0 %v719_v9, %s1625_s18 }
 0xd50   :  { %v722_v11 = vpop.permute.xlu0 %721 }
 0xd51   :  { %v724_v12 = vadd.f32 %v722_v11, %v714_v10 }
 0xd53   :  { %1573 = vtanh.f32 %v724_v12 }
 0xd5d   :  { %v1574_v38 = vpop.eup %1573 }
 0xd5e   :  { %727 = vrot.lane.b32.xlu1 %v1574_v38, %s1625_s18 }
 0xdd0   :  { %v728_v14 = vpop.permute.xlu1 %727 }
 0xdd1   :  { %v730_v15 = vmul.f32 %v1572_v7, %v728_v14 }
 0xdd3   :  { %732 = vrot.lane.b32.xlu0 %v730_v15, %s1628_s3 }
 0xe45   :  { %v733_v17 = vpop.permute.xlu0 %732 }
 0xe46   :  { %735 = vst.msk [vmem:[#allocation2 + $0x20] sm:$0xff] %vm85_vm0, %v733_v17  ;;  %1411 = vmatmul.mubr.msk.f32.vlgmr.msra.gmra.mrb[10].mxu1 %vm85_vm0, %v733_v17 }
 0xe47   :  { %1507 = vmatpush3.bf16.msra.mxu1 %v1716_v25  ;;  %1432 = vmatprep.mubr.msk.f32.mxu1 %vm1627_vm7, %v1626_v21 }
 0xe48   :  { %1508 = vmatprep.subr.bf16.mxu1 %v1624_v13 }
 0xe4b   :  { %1510 = vmatpush3.bf16.msra.mxu1 %v1731_v32 }
 0xe4d   :  { %v1052_v46 = vld [vmem:[#allocation2 + $0x20] sm:$0xff] }
 0xf19   :  { %v804_v18 = vpop.f32.mrb[10].mxu1 }
 0xf1a   :  { %v808_v19 = vadd.f32 %v1760_v37, %v804_v18  ;;  %v1412_v20 = vpop.f32.mrb[11].mxu1  ;;  %v1056_v37 = vld [vmem:[%s1948_s4] sm:$0xff] }
 0xf1b   :  { %v1511_v29 = vpack.c.bf16 %v1057_v28, %v1056_v37 }
 0xf1c   :  { %1575 = vtanh.f32 %v808_v19  ;;  %v1249_v16 = vmul.f32 -1.442695, %v808_v19 }
 0xf1d   :  { %1512 = vmatprep.subr.bf16.mxu0 %v1511_v29 }
 0xf1e   :  { %1577 = vpow2.f32 %v1249_v16 }
 0xf26   :  { %v1576_v22 = vpop.eup %1575 }
 0xf27   :  { %818 = vrot.lane.b32.xlu1 %v1576_v22, %s1625_s18 }
 0xf28   :  { %v1578_v23 = vpop.eup %1577 }
 0xf29   :  { %v812_v24 = vadd.f32 1.0, %v1578_v23 }
 0xf2b   :  { %1579 = vrcp.f32 %v812_v24 }
 0xf35   :  { %v1580_v25 = vpop.eup %1579 }
 0xf36   :  { %v816_v13 = vmul.f32 %v1580_v25, %v724_v12 }
 0xf99   :  { %v819_v26 = vpop.permute.xlu1 %818 }
 0xf9a   :  { %v821_v21 = vmul.f32 %v1580_v25, %v819_v26 }
 0xf9c   :  { %823 = vrot.lane.b32.xlu0 %v821_v21, %s1625_s18 }
0x100e   :  { %v824_v32 = vpop.permute.xlu0 %823 }
0x100f   :  { %v1844_v27 = vadd.f32 %v824_v32, %v816_v13 }
0x1011   :  { %1581 = vtanh.f32 %v1844_v27 }
0x101b   :  { %v1582_v30 = vpop.eup %1581 }
0x101c   :  { %829 = vrot.lane.b32.xlu1 %v1582_v30, %s1625_s18 }
0x108e   :  { %v830_v31 = vpop.permute.xlu1 %829 }
0x108f   :  { %v832_v33 = vmul.f32 %v1580_v25, %v830_v31 }
0x1091   :  { %834 = vrot.lane.b32.xlu0 %v832_v33, %s1628_s3 }
0x1103   :  { %v835_v40 = vpop.permute.xlu0 %834 }
0x1104   :  { %837 = vst.msk [vmem:[#allocation2 + $0x28] sm:$0xff] %vm85_vm0, %v835_v40  ;;  %1422 = vmatmul.mubr.msk.f32.vlgmr.msra.gmra.mrb[8].mxu0 %vm85_vm0, %v835_v40 }
0x1105   :  { %1514 = vmatpush3.bf16.msra.mxu0 %v1511_v29  ;;  %1443 = vmatprep.mubr.msk.f32.mxu0 %vm85_vm0, %v1048_v42 }
0x1106   :  { %1516 = vmatprep.subr.bf16.mxu0 %v1515_v36 }
0x1109   :  { %1518 = vmatpush3.bf16.msra.mxu0 %v1515_v36 }
0x110b   :  { %v1053_v47 = vld [vmem:[#allocation2 + $0x28] sm:$0xff] }
0x110c   :  { %1444 = vmatmul.mubr.msk.f32.vlgmr.msra.gmra.mrb[10].mxu0 %vm85_vm0, %v1049_v43 }
0x110d   :  { %1446 = vmatprep.mubr.msk.f32.mxu0 %vm85_vm0, %v1050_v44 }
0x1110   :  { %1447 = vmatmul.mubr.msk.f32.gmra.mrb[12].mxu0 %vm85_vm0, %v1051_v45 }
0x1111   :  { %1449 = vmatprep.mubr.msk.f32.mxu0 %vm85_vm0, %v1052_v46 }
0x1114   :  { %1450 = vmatmul.mubr.msk.f32.gmra.mrb[14].mxu0 %vm85_vm0, %v1053_v47 }
0x11d7   :  { %v906_v48 = vpop.f32.mrb[8].mxu0 }
0x11d8   :  { %v910_v49 = vadd.f32 %v906_v48, %v1766_v41  ;;  %v1423_v50 = vpop.f32.mrb[9].mxu0 }
0x11da   :  { %1583 = vtanh.f32 %v910_v49  ;;  %v1251_v0 = vmul.f32 -1.442695, %v910_v49 }
0x11dc   :  { %1585 = vpow2.f32 %v1251_v0 }
0x11df   :  { %v1445_v52 = vpop.f32.mrb[10].mxu0 }
0x11e0   :  { %v1161_v53 = vadd.f32 %v1445_v52, %v1873_v51  ;;  %v1155_v54 = vpop.f32.mrb[11].mxu0 }
0x11e1   :  { %v1156_v55 = vadd.f32 %v1873_v51, %v1155_v54 }
0x11e2   :  { %1195 = vst.msk [vmem:[%s1949_s5 + $0x8] sm:$0xff] %vm85_vm0, %v1161_v53 }
0x11e3   :  { %1194 = vst.msk [vmem:[%s1949_s5] sm:$0xff] %vm85_vm0, %v1156_v55  ;;  %v1448_v41 = vpop.f32.mrb[12].mxu0 }
0x11e4   :  { %v1584_v56 = vpop.eup %1583  ;;  %v1171_v57 = vadd.f32 %v1448_v41, %v1873_v51  ;;  %v1165_v58 = vpop.f32.mrb[13].mxu0 }
0x11e5   :  { %v1166_v59 = vadd.f32 %v1873_v51, %v1165_v58  ;;  %920 = vrot.lane.b32.xlu1 %v1584_v56, %s1625_s18 }
0x11e6   :  { %1197 = vst.msk [vmem:[%s1949_s5 + $0x18] sm:$0xff] %vm85_vm0, %v1171_v57  ;;  %v1586_v1 = vpop.eup %1585 }
0x11e7   :  { %1196 = vst.msk [vmem:[%s1949_s5 + $0x10] sm:$0xff] %vm85_vm0, %v1166_v59  ;;  %v1451_v60 = vpop.f32.mrb[14].mxu0  ;;  %v914_v2 = vadd.f32 1.0, %v1586_v1 }
0x11e8   :  { %v1181_v61 = vadd.f32 %v1451_v60, %v1873_v51  ;;  %v1175_v62 = vpop.f32.mrb[15].mxu0 }
0x11e9   :  { %v1176_v63 = vadd.f32 %v1873_v51, %v1175_v62  ;;  %1587 = vrcp.f32 %v914_v2 }
0x11ea   :  { %1199 = vst.msk [vmem:[%s1949_s5 + $0x28] sm:$0xff] %vm85_vm0, %v1181_v61 }
0x11eb   :  { %1198 = vst.msk [vmem:[%s1949_s5 + $0x20] sm:$0xff] %vm85_vm0, %v1176_v63 }
0x11f3   :  { %v1588_v3 = vpop.eup %1587 }
0x11f4   :  { %v918_v6 = vmul.f32 %v1588_v3, %v1844_v27 }
0x1257   :  { %v921_v4 = vpop.permute.xlu1 %920 }
0x1258   :  { %v923_v5 = vmul.f32 %v1588_v3, %v921_v4 }
0x125a   :  { %925 = vrot.lane.b32.xlu0 %v923_v5, %s1625_s18 }
0x12cc   :  { %v926_v7 = vpop.permute.xlu0 %925 }
0x12cd   :  { %v928_v8 = vadd.f32 %v926_v7, %v918_v6 }
0x12cf   :  { %1589 = vtanh.f32 %v928_v8 }
0x12d9   :  { %v1590_v9 = vpop.eup %1589 }
0x12da   :  { %931 = vrot.lane.b32.xlu1 %v1590_v9, %s1625_s18 }
0x134c   :  { %v932_v10 = vpop.permute.xlu1 %931 }
0x134d   :  { %v934_v11 = vmul.f32 %v1588_v3, %v932_v10 }
0x134f   :  { %936 = vrot.lane.b32.xlu0 %v934_v11, %s1628_s3 }
0x13c1   :  { %v937_v12 = vpop.permute.xlu0 %936 }
0x13c2   :  { %939 = vst.msk [vmem:[#allocation2 + $0x30] sm:$0xff] %vm85_vm0, %v937_v12  ;;  %1433 = vmatmul.mubr.msk.f32.vlgmr.msra.gmra.mrb[12].mxu1 %vm85_vm0, %v937_v12 }
0x13c9   :  { %v1054_v38 = vld [vmem:[#allocation2 + $0x30] sm:$0xff] }
0x13ca   :  { %1452 = vmatprep.mubr.msk.f32.mxu0 %vm85_vm0, %v1054_v38 }
0x1495   :  { %v1008_v14 = vpop.f32.mrb[12].mxu1 }
0x1496   :  { %v1012_v15 = vadd.f32 %v1764_v39, %v1008_v14  ;;  %v1434_v17 = vpop.f32.mrb[13].mxu1 }
0x1498   :  { %1591 = vtanh.f32 %v1012_v15  ;;  %v1253_v19 = vmul.f32 -1.442695, %v1012_v15 }
0x149a   :  { %1593 = vpow2.f32 %v1253_v19 }
0x14a2   :  { %v1592_v18 = vpop.eup %1591 }
0x14a3   :  { %1022 = vrot.lane.b32.xlu1 %v1592_v18, %s1625_s18 }
0x14a4   :  { %v1594_v20 = vpop.eup %1593 }
0x14a5   :  { %v1016_v22 = vadd.f32 1.0, %v1594_v20 }
0x14a7   :  { %1595 = vrcp.f32 %v1016_v22 }
0x14b1   :  { %v1596_v16 = vpop.eup %1595 }
0x14b2   :  { %v1020_v25 = vmul.f32 %v1596_v16, %v928_v8 }
0x1515   :  { %v1023_v23 = vpop.permute.xlu1 %1022 }
0x1516   :  { %v1025_v24 = vmul.f32 %v1596_v16, %v1023_v23 }
0x1518   :  { %1027 = vrot.lane.b32.xlu0 %v1025_v24, %s1625_s18 }
0x158a   :  { %v1028_v26 = vpop.permute.xlu0 %1027 }
0x158b   :  { %v1030_v21 = vadd.f32 %v1028_v26, %v1020_v25 }
0x158d   :  { %1597 = vtanh.f32 %v1030_v21 }
0x1597   :  { %v1598_v39 = vpop.eup %1597 }
0x1598   :  { %1033 = vrot.lane.b32.xlu1 %v1598_v39, %s1625_s18  ;;  %s1599_s18 = scalar_lea.vmem %s1210_s29, 256 }
0x1599   :  { %p1600_p0 = scmp.ne.s32.totalorder %s1210_s29, %s1599_s18  ;;  %p1605_p2 = scmp.lt.s32.totalorder %s1599_s18, %s1599_s18 }
0x159b   :  { %p1606_p3 = por %p1605_p2, %p1604_p1 }
0x159c   :  { %1044 = vrot.lane.b32.xlu1 %v1030_v21, %s1629_s27 }
0x159d   :  { %p1607_p4 = pnand %p1606_p3, %p1600_p0 }
0x160a   :  { %v1034_v13 = vpop.permute.xlu1 %1033 }
0x160b   :  { %v1036_v32 = vmul.f32 %v1596_v16, %v1034_v13 }
0x160d   :  { %1038 = vrot.lane.b32.xlu0 %v1036_v32, %s1628_s3 }
0x160e   :  { %v1045_v27 = vpop.permute.xlu1 %1044 }
0x160f   :  { %1047 = vst.msk [vmem:[#allocation3 + $0x8] sm:$0xff] %vm85_vm0, %v1045_v27 }
0x167f   :  { %v1039_v37 = vpop.permute.xlu0 %1038 }
0x1680   :  { %1041 = vst.msk [vmem:[#allocation2 + $0x38] sm:$0xff] %vm85_vm0, %v1039_v37  ;;  %1042 = vst.msk [vmem:[#allocation3] sm:$0xff] %vm85_vm0, %v1039_v37 }
0x1687   :  { %v1055_v28 = vld [vmem:[#allocation2 + $0x38] sm:$0xff] }
0x1688   :  { %1453 = vmatmul.mubr.msk.f32.gmra.mrb[16].mxu0 %vm85_vm0, %v1055_v28 }
0x1689   :  { %1610 = shalt.err (!%p1607_p4)
}
0x168a   :  { %s1611_s7 = scalar_lea.hbm %s1950_s6, 256 }
0x168b   :  { %p1612_p5 = scmp.ne.s32.totalorder %s1950_s6, %s1611_s7  ;;  %p1615_p6 = scmp.lt.u32.totalorder %s1611_s7, %s1950_s6 }
0x168d   :  { %p1617_p7 = pnand %p1615_p6, %p1612_p5 }
0x168f   :  { %1620 = shalt.err (!%p1617_p7)
}
0x1690   :  { %s1631_s11 = smov 128   ;;  %s1632_s12 = smov 8  }
0x1691   :  { %1215 = dma.vmem_to_hbm [thread:$0]  %s1210_s29, 256, %s1950_s6, [#allocation4], %s1631_s11, %s1631_s11, %s1632_s12  }
0x175b   :  { %v1454_v29 = vpop.f32.mrb[16].mxu0 }
0x175c   :  { %v1191_v30 = vadd.f32 %v1454_v29, %v1873_v51  ;;  %v1185_v31 = vpop.f32.mrb[17].mxu0 }
0x175d   :  { %v1186_v33 = vadd.f32 %v1873_v51, %v1185_v31 }
0x175e   :  { %1201 = vst.msk [vmem:[%s1949_s5 + $0x38] sm:$0xff] %vm85_vm0, %v1191_v30 }
0x175f   :  { %1200 = vst.msk [vmem:[%s1949_s5 + $0x30] sm:$0xff] %vm85_vm0, %v1186_v33 }
0x1760   :  { %1621 = dma.done.wait [#allocation4], 256  }
0x1761   :  { %1622 = vsyncadd [#allocation4], 4294967040 }
0x1762   :  { %1221 = vsyncpa [#allocation4], 1 }

</bundles_post_ra>
